<compile_context>
chip_gen: v6e
topology: v6e:2x2x1
jax: 0.10.0
libtpu: 0.0.40
codegen_flags: <defaults>
</compile_context>

<pallas_src>
import functools

import jax
import jax.numpy as jnp
from jax.experimental import pallas as pl
from jax.experimental.pallas import tpu as pltpu


def _round_up(x, m):
    return ((x + m - 1) // m) * m


def _pick_tile_b(batch_size, num_classes):
    """Batch tile: multiple of 8, sized so a double-buffered f32 logits tile
    stays well under the scoped VMEM limit on every generation (incl. v7x)."""
    budget_bytes = 4 * 1024 * 1024              # per logits buffer
    lanes = max(num_classes, 128)               # lane padding to 128
    max_tb = max(8, (budget_bytes // (4 * lanes)) // 8 * 8)
    return min(_round_up(batch_size, 8), max_tb, 4096)


def _penalize_loss_kernel(x_ref, t_ref, out_ref,
                          ce_acc, pen_acc, cnt_acc,
                          *, weight, batch_size, tile_b):
    i = pl.program_id(0)

    @pl.when(i == 0)
    def _():
        ce_acc[...] = jnp.zeros_like(ce_acc)
        pen_acc[...] = jnp.zeros_like(pen_acc)
        cnt_acc[...] = jnp.zeros_like(cnt_acc)

    x = x_ref[...].astype(jnp.float32)          # (TB, C) logits
    t = t_ref[...]                              # (TB, 1) int32 targets
    TB, C = x.shape

    # Valid-row mask (handles batch padding up to a multiple of TB).
    row = jax.lax.broadcasted_iota(jnp.int32, (TB, 1), 0) + i * tile_b
    valid = (row < batch_size).astype(jnp.float32)              # (TB, 1)

    # --- row-wise logsumexp pieces (no full probs materialization) ---
    m = jnp.max(x, axis=1, keepdims=True)                        # (TB, 1)
    e = jnp.exp(x - m)                                           # (TB, C)
    s = jnp.sum(e, axis=1, keepdims=True)                        # (TB, 1)
    log_s = jnp.log(s)                                           # (TB, 1)
    lse = log_s + m                                              # logsumexp(x)

    # --- cross entropy on the target class: -log p_t = lse - x_t ---
    cls = jax.lax.broadcasted_iota(jnp.int32, (TB, C), 1)        # (TB, C)
    onehot = (cls == t).astype(jnp.float32)                      # (TB, C)
    x_t = jnp.sum(x * onehot, axis=1, keepdims=True)             # (TB, 1)
    ce_i = (lse - x_t) * valid                                   # (TB, 1)

    # --- penalty term ---
    # pred == 0  iff  class-0 logit is (one of) the max; softmax is monotone,
    # and >= reproduces torch's first-index tie-breaking of .max(1).
    x0 = x[:, 0:1]                                               # (TB, 1)
    pred_is_0 = (x0 >= m)                                        # (TB, 1) bool
    tgt_is_1 = (t == 1)                                          # (TB, 1) bool
    pmask = jnp.logical_and(pred_is_0, tgt_is_1).astype(jnp.float32) * valid

    # log(1/(1-p0)) = -log(1 - e0/s) = log(s) - log(s - e0), stable form.
    e0 = jnp.exp(x0 - m)                                         # (TB, 1)
    tiny = jnp.float32(jnp.finfo(jnp.float32).tiny)
    pen_raw = log_s - jnp.log(jnp.maximum(s - e0, tiny))         # (TB, 1)
    pen_i = pen_raw * pmask                                      # (TB, 1)

    # --- accumulate partial sums in resident scratch ---
    ce_acc[...] += jnp.sum(ce_i, axis=0, keepdims=True)          # (1, 1)
    pen_acc[...] += jnp.sum(pen_i, axis=0, keepdims=True)        # (1, 1)
    cnt_acc[...] += jnp.sum(pmask, axis=0, keepdims=True)        # (1, 1)

    @pl.when(i == pl.num_programs(0) - 1)
    def _():
        ce = ce_acc[...] / jnp.float32(batch_size)
        cnt = cnt_acc[...]
        pen = jnp.where(cnt > 0.0,
                        pen_acc[...] / jnp.maximum(cnt, 1.0),
                        jnp.zeros_like(cnt))
        out_ref[...] = ce + jnp.float32(weight) * pen


def penalize_loss(predicts, targets, weight):
    """predicts: (B, C) float logits; targets: (B,) int labels -> scalar loss."""
    B, C = predicts.shape

    TB = _pick_tile_b(B, C)
    Bp = _round_up(B, TB)

    targets_i32 = targets.astype(jnp.int32)
    if Bp != B:
        predicts = jnp.pad(predicts, ((0, Bp - B), (0, 0)))
        targets_i32 = jnp.pad(targets_i32, (0, Bp - B))
    t2 = targets_i32.reshape(Bp, 1)

    grid = (Bp // TB,)

    out = pl.pallas_call(
        functools.partial(_penalize_loss_kernel,
                          weight=float(weight),
                          batch_size=B,
                          tile_b=TB),
        out_shape=jax.ShapeDtypeStruct((1, 1), jnp.float32),
        grid_spec=pltpu.PrefetchScalarGridSpec(
            num_scalar_prefetch=0,
            grid=grid,
            in_specs=[
                pl.BlockSpec((TB, C), lambda i: (i, 0)),   # logits tile
                pl.BlockSpec((TB, 1), lambda i: (i, 0)),   # target ids tile
            ],
            out_specs=pl.BlockSpec((1, 1), lambda i: (0, 0)),
            scratch_shapes=[
                pltpu.VMEM((1, 1), jnp.float32),   # ce_sum
                pltpu.VMEM((1, 1), jnp.float32),   # pen_sum
                pltpu.VMEM((1, 1), jnp.float32),   # count
            ],
        ),
        compiler_params=pltpu.CompilerParams(
            dimension_semantics=("arbitrary",),   # batch axis carries accumulators
        ),
    )(predicts, t2)
    return out[0, 0]


def _reference(predicts, targets, weight):
    """Pure-JAX reference mirroring the PyTorch forward."""
    probs = jax.nn.softmax(predicts.astype(jnp.float32), axis=1)
    onehot = jax.nn.one_hot(targets, predicts.shape[1], dtype=jnp.float32)
    ce = jnp.mean(-jnp.log(jnp.sum(probs * onehot, axis=1)))
    preds = jnp.argmax(probs, axis=1)
    mask = jnp.logical_and(targets == 1, preds == 0).astype(jnp.float32)
    pen_i = jnp.log(1.0 / (1.0 - probs[:, 0]))
    count = jnp.sum(mask)
    pen = jnp.where(count > 0, jnp.sum(mask * pen_i) / jnp.maximum(count, 1.0), 0.0)
    return ce + weight * pen


if __name__ == "__main__":
    key = jax.random.PRNGKey(0)
    k_logits, k_labels = jax.random.split(key)

    B, C = 8, 10
    weight = 0.5  # module's __init__ argument, set deterministically in-script

    predicts = jax.random.normal(k_logits, (B, C), dtype=jnp.float32)
    targets = jax.random.randint(k_labels, (B,), 0, C, dtype=jnp.int32)
    # Force at least one (target==1) sample so the penalty branch is exercised.
    targets = targets.at[0].set(1)

    loss = penalize_loss(predicts, targets, weight)
    loss = jax.block_until_ready(loss)

    ref = _reference(predicts, targets, weight)
    assert jnp.allclose(loss, ref, rtol=1e-5, atol=1e-5), (loss, ref)

    print("KERNEL_OK")
</pallas_src>

<mosaic_0001>
module attributes {stable_mosaic.version = 11 : i64} {
  func.func @_penalize_loss_kernel(%arg0: i32, %arg1: memref<8x10xf32, #tpu.memory_space<vmem>>, %arg2: memref<8x1xi32, #tpu.memory_space<vmem>>, %arg3: memref<1x1xf32, #tpu.memory_space<vmem>>, %arg4: memref<1x1xf32, #tpu.memory_space<vmem>>, %arg5: memref<1x1xf32, #tpu.memory_space<vmem>>, %arg6: memref<1x1xf32, #tpu.memory_space<vmem>>) attributes {dimension_semantics = [#tpu.dimension_semantics<arbitrary>], iteration_bounds = array<i64: 1>, scalar_prefetch = 0 : i64, scratch_operands = 3 : i64, tpu.core_type = #tpu.core_type<tc>, window_params = [{transform_indices = @transform_0, window_bounds = array<i64: 8, 10>}, {transform_indices = @transform_1, window_bounds = array<i64: 8, 1>}, {pipeline_mode = #tpu.pipeline_mode<synchronous>, transform_indices = @transform_2, window_bounds = array<i64: 1, 1>}]} {
    %c0_i32 = arith.constant 0 : i32
    %0 = arith.cmpi eq, %arg0, %c0_i32 : i32
    %1 = arith.extui %0 : i1 to i32
    %c0_i32_0 = arith.constant 0 : i32
    %2 = arith.cmpi ne, %1, %c0_i32_0 : i32
    scf.if %2 {
      %cst_25 = arith.constant 0.000000e+00 : f32
      %66 = vector.broadcast %cst_25 : f32 to vector<1x1xf32>
      %c0_26 = arith.constant 0 : index
      %c0_27 = arith.constant 0 : index
      %67 = vector.load %arg4[%c0_26, %c0_27] : memref<1x1xf32, #tpu.memory_space<vmem>>, vector<1x1xf32>
      tpu.vector_store %arg4[%c0_26, %c0_27], %66 {strides = array<i32>} : memref<1x1xf32, #tpu.memory_space<vmem>>, vector<1x1xf32>,
      %cst_28 = arith.constant 0.000000e+00 : f32
      %68 = vector.broadcast %cst_28 : f32 to vector<1x1xf32>
      %c0_29 = arith.constant 0 : index
      %c0_30 = arith.constant 0 : index
      %69 = vector.load %arg5[%c0_29, %c0_30] : memref<1x1xf32, #tpu.memory_space<vmem>>, vector<1x1xf32>
      tpu.vector_store %arg5[%c0_29, %c0_30], %68 {strides = array<i32>} : memref<1x1xf32, #tpu.memory_space<vmem>>, vector<1x1xf32>,
      %cst_31 = arith.constant 0.000000e+00 : f32
      %70 = vector.broadcast %cst_31 : f32 to vector<1x1xf32>
      %c0_32 = arith.constant 0 : index
      %c0_33 = arith.constant 0 : index
      %71 = vector.load %arg6[%c0_32, %c0_33] : memref<1x1xf32, #tpu.memory_space<vmem>>, vector<1x1xf32>
      tpu.vector_store %arg6[%c0_32, %c0_33], %70 {strides = array<i32>} : memref<1x1xf32, #tpu.memory_space<vmem>>, vector<1x1xf32>,
    } else {
    }
    %c0 = arith.constant 0 : index
    %c0_1 = arith.constant 0 : index
    %3 = vector.load %arg1[%c0, %c0_1] : memref<8x10xf32, #tpu.memory_space<vmem>>, vector<8x10xf32>
    %c0_2 = arith.constant 0 : index
    %c0_3 = arith.constant 0 : index
    %4 = vector.load %arg2[%c0_2, %c0_3] : memref<8x1xi32, #tpu.memory_space<vmem>>, vector<8x1xi32>
    %5 = tpu.iota {dimensions = array<i32: 0>} : vector<8x1xi32>
    %c8_i32 = arith.constant 8 : i32
    %6 = arith.muli %arg0, %c8_i32 : i32
    %7 = vector.broadcast %6 : i32 to vector<8x1xi32>
    %8 = arith.addi %5, %7 : vector<8x1xi32>
    %c8_i32_4 = arith.constant 8 : i32
    %9 = vector.broadcast %c8_i32_4 : i32 to vector<8x1xi32>
    %10 = arith.cmpi slt, %8, %9 : vector<8x1xi32>
    %11 = arith.extui %10 : vector<8x1xi1> to vector<8x1xi32>
    %12 = arith.sitofp %11 : vector<8x1xi32> to vector<8x1xf32>
    %cst = arith.constant dense<0xFF800000> : vector<8xf32>
    %13 = vector.multi_reduction <maximumf>, %3, %cst [1] : vector<8x10xf32> to vector<8xf32>
    %14 = vector.shape_cast %13 : vector<8xf32> to vector<8x1xf32>
    %15 = vector.broadcast %14 : vector<8x1xf32> to vector<8x10xf32>
    %16 = arith.subf %3, %15 : vector<8x10xf32>
    %17 = math.exp %16 : vector<8x10xf32>
    %cst_5 = arith.constant dense<0.000000e+00> : vector<8xf32>
    %18 = vector.multi_reduction <add>, %17, %cst_5 [1] : vector<8x10xf32> to vector<8xf32>
    %19 = vector.shape_cast %18 : vector<8xf32> to vector<8x1xf32>
    %20 = math.log %19 : vector<8x1xf32>
    %21 = arith.addf %20, %14 : vector<8x1xf32>
    %22 = tpu.iota {dimensions = array<i32: 1>} : vector<8x10xi32>
    %23 = vector.broadcast %4 : vector<8x1xi32> to vector<8x10xi32>
    %24 = arith.cmpi eq, %22, %23 : vector<8x10xi32>
    %25 = arith.extui %24 : vector<8x10xi1> to vector<8x10xi32>
    %26 = arith.sitofp %25 : vector<8x10xi32> to vector<8x10xf32>
    %27 = arith.mulf %3, %26 : vector<8x10xf32>
    %cst_6 = arith.constant dense<0.000000e+00> : vector<8xf32>
    %28 = vector.multi_reduction <add>, %27, %cst_6 [1] : vector<8x10xf32> to vector<8xf32>
    %29 = vector.shape_cast %28 : vector<8xf32> to vector<8x1xf32>
    %30 = arith.subf %21, %29 : vector<8x1xf32>
    %31 = arith.mulf %30, %12 : vector<8x1xf32>
    %32 = vector.extract_strided_slice %3 {offsets = [0, 0], sizes = [8, 1], strides = [1, 1]} : vector<8x10xf32> to vector<8x1xf32>
    %33 = arith.cmpf oge, %32, %14 : vector<8x1xf32>
    %c1_i32 = arith.constant 1 : i32
    %34 = vector.broadcast %c1_i32 : i32 to vector<8x1xi32>
    %35 = arith.cmpi eq, %4, %34 : vector<8x1xi32>
    %36 = arith.andi %33, %35 : vector<8x1xi1>
    %37 = arith.extui %36 : vector<8x1xi1> to vector<8x1xi32>
    %38 = arith.sitofp %37 : vector<8x1xi32> to vector<8x1xf32>
    %39 = arith.mulf %38, %12 : vector<8x1xf32>
    %40 = arith.subf %32, %14 : vector<8x1xf32>
    %41 = math.exp %40 : vector<8x1xf32>
    %42 = arith.subf %19, %41 : vector<8x1xf32>
    %cst_7 = arith.constant 1.17549435E-38 : f32
    %43 = vector.broadcast %cst_7 : f32 to vector<8x1xf32>
    %44 = arith.maximumf %42, %43 : vector<8x1xf32>
    %45 = math.log %44 : vector<8x1xf32>
    %46 = arith.subf %20, %45 : vector<8x1xf32>
    %47 = arith.mulf %46, %39 : vector<8x1xf32>
    %c0_8 = arith.constant 0 : index
    %c0_9 = arith.constant 0 : index
    %48 = vector.load %arg4[%c0_8, %c0_9] : memref<1x1xf32, #tpu.memory_space<vmem>>, vector<1x1xf32>
    %cst_10 = arith.constant dense<0.000000e+00> : vector<1xf32>
    %49 = vector.multi_reduction <add>, %31, %cst_10 [0] : vector<8x1xf32> to vector<1xf32>
    %50 = vector.shape_cast %49 : vector<1xf32> to vector<1x1xf32>
    %51 = arith.addf %48, %50 : vector<1x1xf32>
    %c0_11 = arith.constant 0 : index
    %c0_12 = arith.constant 0 : index
    %52 = vector.load %arg4[%c0_11, %c0_12] : memref<1x1xf32, #tpu.memory_space<vmem>>, vector<1x1xf32>
    tpu.vector_store %arg4[%c0_11, %c0_12], %51 {strides = array<i32>} : memref<1x1xf32, #tpu.memory_space<vmem>>, vector<1x1xf32>,
    %c0_13 = arith.constant 0 : index
    %c0_14 = arith.constant 0 : index
    %53 = vector.load %arg5[%c0_13, %c0_14] : memref<1x1xf32, #tpu.memory_space<vmem>>, vector<1x1xf32>
    %cst_15 = arith.constant dense<0.000000e+00> : vector<1xf32>
    %54 = vector.multi_reduction <add>, %47, %cst_15 [0] : vector<8x1xf32> to vector<1xf32>
    %55 = vector.shape_cast %54 : vector<1xf32> to vector<1x1xf32>
    %56 = arith.addf %53, %55 : vector<1x1xf32>
    %c0_16 = arith.constant 0 : index
    %c0_17 = arith.constant 0 : index
    %57 = vector.load %arg5[%c0_16, %c0_17] : memref<1x1xf32, #tpu.memory_space<vmem>>, vector<1x1xf32>
    tpu.vector_store %arg5[%c0_16, %c0_17], %56 {strides = array<i32>} : memref<1x1xf32, #tpu.memory_space<vmem>>, vector<1x1xf32>,
    %c0_18 = arith.constant 0 : index
    %c0_19 = arith.constant 0 : index
    %58 = vector.load %arg6[%c0_18, %c0_19] : memref<1x1xf32, #tpu.memory_space<vmem>>, vector<1x1xf32>
    %cst_20 = arith.constant dense<0.000000e+00> : vector<1xf32>
    %59 = vector.multi_reduction <add>, %39, %cst_20 [0] : vector<8x1xf32> to vector<1xf32>
    %60 = vector.shape_cast %59 : vector<1xf32> to vector<1x1xf32>
    %61 = arith.addf %58, %60 : vector<1x1xf32>
    %c0_21 = arith.constant 0 : index
    %c0_22 = arith.constant 0 : index
    %62 = vector.load %arg6[%c0_21, %c0_22] : memref<1x1xf32, #tpu.memory_space<vmem>>, vector<1x1xf32>
    tpu.vector_store %arg6[%c0_21, %c0_22], %61 {strides = array<i32>} : memref<1x1xf32, #tpu.memory_space<vmem>>, vector<1x1xf32>,
    %c0_i32_23 = arith.constant 0 : i32
    %63 = arith.cmpi eq, %arg0, %c0_i32_23 : i32
    %64 = arith.extui %63 : i1 to i32
    %c0_i32_24 = arith.constant 0 : i32
    %65 = arith.cmpi ne, %64, %c0_i32_24 : i32
    scf.if %65 {
      %c0_25 = arith.constant 0 : index
      %c0_26 = arith.constant 0 : index
      %66 = vector.load %arg4[%c0_25, %c0_26] : memref<1x1xf32, #tpu.memory_space<vmem>>, vector<1x1xf32>
      %cst_27 = arith.constant 8.000000e+00 : f32
      %67 = vector.broadcast %cst_27 : f32 to vector<1x1xf32>
      %68 = arith.divf %66, %67 : vector<1x1xf32>
      %c0_28 = arith.constant 0 : index
      %c0_29 = arith.constant 0 : index
      %69 = vector.load %arg6[%c0_28, %c0_29] : memref<1x1xf32, #tpu.memory_space<vmem>>, vector<1x1xf32>
      %cst_30 = arith.constant 0.000000e+00 : f32
      %70 = vector.broadcast %cst_30 : f32 to vector<1x1xf32>
      %71 = arith.cmpf ogt, %69, %70 : vector<1x1xf32>
      %c0_31 = arith.constant 0 : index
      %c0_32 = arith.constant 0 : index
      %72 = vector.load %arg5[%c0_31, %c0_32] : memref<1x1xf32, #tpu.memory_space<vmem>>, vector<1x1xf32>
      %cst_33 = arith.constant 1.000000e+00 : f32
      %73 = vector.broadcast %cst_33 : f32 to vector<1x1xf32>
      %74 = arith.maximumf %69, %73 : vector<1x1xf32>
      %75 = arith.divf %72, %74 : vector<1x1xf32>
      %cst_34 = arith.constant 0.000000e+00 : f32
      %76 = vector.broadcast %cst_34 : f32 to vector<1x1xf32>
      %77 = arith.select %71, %75, %76 : vector<1x1xi1>, vector<1x1xf32>
      %cst_35 = arith.constant 5.000000e-01 : f32
      %78 = vector.broadcast %cst_35 : f32 to vector<1x1xf32>
      %79 = arith.mulf %78, %77 : vector<1x1xf32>
      %80 = arith.addf %68, %79 : vector<1x1xf32>
      %c0_36 = arith.constant 0 : index
      %c0_37 = arith.constant 0 : index
      %81 = vector.load %arg3[%c0_36, %c0_37] : memref<1x1xf32, #tpu.memory_space<vmem>>, vector<1x1xf32>
      tpu.vector_store %arg3[%c0_36, %c0_37], %80 {strides = array<i32>} : memref<1x1xf32, #tpu.memory_space<vmem>>, vector<1x1xf32>,
    } else {
    }
    return
  }
  func.func @transform_0(%arg0: i32) -> (i32, i32) {
    %c0_i32 = arith.constant 0 : i32
    %c0_i32_0 = arith.constant 0 : i32
    return %arg0, %c0_i32 : i32, i32
  }
  func.func @transform_1(%arg0: i32) -> (i32, i32) {
    %c0_i32 = arith.constant 0 : i32
    %c0_i32_0 = arith.constant 0 : i32
    return %arg0, %c0_i32 : i32, i32
  }
  func.func @transform_2(%arg0: i32) -> (i32, i32) {
    %c0_i32 = arith.constant 0 : i32
    %c0_i32_0 = arith.constant 0 : i32
    %c0_i32_1 = arith.constant 0 : i32
    return %c0_i32, %c0_i32_0 : i32, i32
  }
}

</mosaic_0001>

<bundles_post_ra>
// kernel: tpu_custom_call.1
= control target key start
LH: loop header
LB: loop body
LE: loop exit
PB: predicated region body
PF: predicated region fallthrough
CT: control target
= control target key end

     0   :  { %vm30_vm0 = vcmask 80896   ;;  %v166_v2 = vmov 0   ;;  %s205_s0 = inlined_call_operand.vmem [shape: f32[8,10], index: 0, kind: input, shape index: {}]   ;;  %s206_s1 = inlined_call_operand.vmem [shape: s32[8,1], index: 1, kind: input, shape index: {}]   ;;  %s207_s2 = inlined_call_operand.hbm [shape: f32[1,1], index: 2, kind: output, shape index: {}]  }
   0x1   :  { %v20_v0 = vld [vmem:[%s205_s0] sm:$0xff]  ;;  %135 = vset.pattern.permute.xlu0 %v166_v2 }
   0x2   :  { %v31_v1 = vsel %vm30_vm0, %v20_v0, -inf }
   0x3   :  { %7 = vsyncpa [#allocation6], 0  ;;  %32 = vmax.xlane.f32.xlu0 %v31_v1  ;;  %vm16_vm1 = vcmask 0   ;;  %v167_v3 = vmov 0.0   ;;  %v21_v4 = vld [vmem:[%s206_s1] sm:$0xff]  ;;  %vm80_vm3 = vcmask 7168   ;;  %v43_v9 = vlaneseq }
   0x4   :  { %18 = vst.msk [vmem:[#allocation3] sm:$0x1] %vm16_vm1, %v167_v3  ;;  %19 = vst.msk [vmem:[#allocation4] sm:$0x1] %vm16_vm1, %v167_v3  ;;  %vm58_vm2 = vcmp.eq.s32.totalorder %v21_v4, 1  ;;  %s168_s0 = smov [#allocation5]  }
   0x5   :  { %17 = vst.msk [vmem:[#allocation2] sm:$0x1] %vm16_vm1, %v167_v3  ;;  %v44_v13 = vand.u32 127, %v43_v9  ;;  %s122_s1 = sshll.u32 %s168_s0, 4  ;;  %s123_s1 = int_to_ptr.vmem [resolvable:$true] %s122_s1 }
   0x6   :  { %s144_s13 = scalar_lea.vmem %s123_s1, 16  ;;  %s148_s14 = scalar_lea.vmem %s123_s1, 32 }
   0x7   :  { %p145_p0 = scmp.ne.s32.totalorder %s123_s1, %s144_s13  ;;  %p149_p1 = scmp.lt.s32.totalorder %s123_s1, %s123_s1 }
   0x8   :  { %p150_p2 = scmp.lt.s32.totalorder %s148_s14, %s144_s13 }
   0xa   :  { %p151_p3 = por %p150_p2, %p149_p1 }
   0xb   :  { %v90_v18 = vld [vmem:[#allocation4] sm:$0x1]  ;;  %v79_v54 = vld [vmem:[#allocation3] sm:$0x1] }
   0xc   :  { %v69_v48 = vld [vmem:[#allocation2] sm:$0x1]  ;;  %p152_p4 = pnand %p151_p3, %p145_p0 }
  0x19   :  { %46 = vperm.xlu0 %135, %v21_v4  }
  0x8c   :  { %v33_v5 = vpop.xlane.xlu0 %32 }
  0x8d   :  { %v34_v6 = vsub.f32 %v20_v0, %v33_v5  ;;  %vm57_vm4 = vcmp.ge.f32.partialorder %v20_v0, %v33_v5 }
  0x8e   :  { %vm59_vm5 = vmand %vm57_vm4, %vm58_vm2 }
  0x8f   :  { %v35_v7 = vmul.f32 1.442695, %v34_v6  ;;  %v131_v8 = vsel %vm59_vm5, 1.0, %v167_v3 }
  0x90   :  { %v91_v10 = vsel %vm80_vm3, %v131_v8, 0.0 }
  0x91   :  { %136 = vpow2.f32 %v35_v7  ;;  %v92_v11 = vrot.slane %v91_v10, 4 }
  0x93   :  { %v93_v12 = vadd.f32 %v92_v11, %v91_v10 }
  0x94   :  { %v47_v14 = vpop.permute.xlu0 %46 }
  0x95   :  { %v94_v15 = vrot.slane %v93_v12, 2  ;;  %vm48_vm6 = vcmp.eq.s32.totalorder %v44_v13, %v47_v14 }
  0x96   :  { %v130_v19 = vsel %vm48_vm6, 1.0, %v167_v3 }
  0x97   :  { %v95_v16 = vadd.f32 %v94_v15, %v93_v12  ;;  %v51_v22 = vmul.f32 %v130_v19, %v20_v0 }
  0x99   :  { %v96_v17 = vrot.slane %v95_v16, 1  ;;  %v52_v25 = vsel %vm30_vm0, %v51_v22, 0.0 }
  0x9b   :  { %v97_v20 = vadd.f32 %v96_v17, %v95_v16 }
  0x9d   :  { %v98_v21 = vadd.f32 %v97_v20, %v90_v18 }
  0x9e   :  { %v137_v23 = vpop.eup %136 }
  0x9f   :  { %99 = vst.msk [vmem:[#allocation4] sm:$0x1] %vm16_vm1, %v98_v21  ;;  %v37_v24 = vsel %vm30_vm0, %v137_v23, 0.0 }
  0xa0   :  { %38 = vadd.xlane.f32.xlu1 %v37_v24 }
  0xa4   :  { %53 = vadd.xlane.f32.xlu1 %v52_v25 }
  0xa6   :  { %v106_v44 = vld [vmem:[#allocation4] sm:$0x1] }
  0xa7   :  { %v109_v49 = vmax.f32 %v106_v44, 1.0  ;;  %vm107_vm7 = vcmp.gt.f32.partialorder %v106_v44, 0.0 }
 0x129   :  { %v39_v26 = vpop.xlane.xlu1 %38 }
 0x12a   :  { %138 = vlog2.f32 %v39_v26  ;;  %v63_v27 = vsub.f32 %v39_v26, %v137_v23 }
 0x12c   :  { %v64_v28 = vmax.f32 %v63_v27, 1.1754944e-38 }
 0x12d   :  { %v54_v31 = vpop.xlane.xlu1 %53 }
 0x12e   :  { %140 = vlog2.f32 %v64_v28 }
 0x12f   :  { %142 = vrcp.f32 %v109_v49 }
 0x137   :  { %v139_v29 = vpop.eup %138 }
 0x138   :  { %v41_v30 = vmul.f32 0.6931472, %v139_v29 }
 0x13a   :  { %v42_v32 = vadd.f32 %v41_v30, %v33_v5 }
 0x13b   :  { %v141_v33 = vpop.eup %140 }
 0x13c   :  { %v66_v34 = vmul.f32 0.6931472, %v141_v33  ;;  %v55_v35 = vsub.f32 %v42_v32, %v54_v31  ;;  %v143_v57 = vpop.eup %142 }
 0x13e   :  { %v67_v36 = vsub.f32 %v41_v30, %v66_v34  ;;  %v70_v37 = vrot.slane %v55_v35, 4 }
 0x140   :  { %v68_v38 = vmul.f32 %v131_v8, %v67_v36  ;;  %v71_v39 = vadd.f32 %v70_v37, %v55_v35 }
 0x142   :  { %v81_v40 = vsel %vm80_vm3, %v68_v38, 0.0  ;;  %v72_v41 = vrot.slane %v71_v39, 2 }
 0x143   :  { %v82_v42 = vrot.slane %v81_v40, 4 }
 0x144   :  { %v73_v43 = vadd.f32 %v72_v41, %v71_v39 }
 0x145   :  { %v83_v45 = vadd.f32 %v82_v42, %v81_v40 }
 0x146   :  { %v74_v46 = vrot.slane %v73_v43, 1 }
 0x147   :  { %v84_v47 = vrot.slane %v83_v45, 2 }
 0x148   :  { %v75_v50 = vadd.f32 %v74_v46, %v73_v43 }
 0x149   :  { %v85_v51 = vadd.f32 %v84_v47, %v83_v45 }
 0x14a   :  { %v76_v52 = vadd.f32 %v75_v50, %v69_v48 }
 0x14b   :  { %v86_v53 = vrot.slane %v85_v51, 1 }
 0x14c   :  { %78 = vst.msk [vmem:[#allocation2] sm:$0x1] %vm16_vm1, %v76_v52 }
 0x14d   :  { %v87_v55 = vadd.f32 %v86_v53, %v85_v51 }
 0x14f   :  { %v88_v56 = vadd.f32 %v87_v55, %v79_v54 }
 0x151   :  { %89 = vst.msk [vmem:[#allocation3] sm:$0x1] %vm16_vm1, %v88_v56 }
 0x153   :  { %v103_v59 = vld [vmem:[#allocation2] sm:$0x1] }
 0x154   :  { %v105_v62 = vmul.f32 0.125, %v103_v59 }
 0x158   :  { %v108_v58 = vld [vmem:[#allocation3] sm:$0x1] }
 0x159   :  { %v111_v60 = vmul.f32 %v143_v57, %v108_v58 }
 0x15b   :  { %v112_v61 = vsel %vm107_vm7, %v111_v60, 0.0 }
 0x15c   :  { %v113_v63 = vmul.f32 0.5, %v112_v61 }
 0x15e   :  { %v114_v0 = vadd.f32 %v113_v63, %v105_v62 }
 0x160   :  { %115 = vst.msk [vmem:[#allocation5] sm:$0x1] %vm16_vm1, %v114_v0 }
 0x161   :  { %155 = shalt.err (!%p152_p4)
}
 0x162   :  { %125 = dma.vmem_to_hbm [thread:$0]  %s123_s1, 16, %s207_s2, [#allocation6]  }
 0x163   :  { %164 = dma.done.wait [#allocation6], 16  }
 0x164   :  { %165 = vsyncadd [#allocation6], 4294967280 }
 0x165   :  { %129 = vsyncpa [#allocation6], 1 }

</bundles_post_ra>
